<compile_context>
chip_gen: v5e
topology: v5e:2x2
jax: 0.10.0
libtpu: 0.0.40
codegen_flags: <defaults>
</compile_context>

<pallas_src>
import functools
import math

import jax
import jax.numpy as jnp
from jax.experimental import pallas as pl
from jax.experimental.pallas import tpu as pltpu

LANE = 128
SUBLANE = 8
ACC_ROWS = 4 * SUBLANE            # (32, 128) accumulator: 4 independent (8,128) chains
TM = 4096                         # rows per tile: (4096, 128) f32 = 2 MiB per buffer
FAST_PATH_MAX_FLOATS = 128 * 1024  # <= 512 KiB packed per tensor -> plain jnp


def _cdiv(a, b):
    return -(-a // b)


def _round_up(a, b):
    return _cdiv(a, b) * b


def _mae_kernel(x_ref, t_ref, o_ref, acc_ref, *, inv_n):
    step = pl.program_id(0)

    @pl.when(step == 0)
    def _():
        acc_ref[...] = jnp.zeros_like(acc_ref)

    # |x - t| over the packed (tm, 128) tile, folded into the (32, 128) vector
    # accumulator with VPU adds only (no per-step cross-lane reduce, no SMEM
    # scalar read-modify-write chain). The reshape is (8,128)-tile aligned.
    d = jnp.abs(x_ref[...] - t_ref[...])
    acc_ref[...] += jnp.sum(d.reshape(-1, ACC_ROWS, LANE), axis=0)

    # Single cross-lane reduction + 1/N scale on the last step.
    @pl.when(step == pl.num_programs(0) - 1)
    def _():
        o_ref[0, 0] = jnp.sum(acc_ref[...]) * jnp.float32(inv_n)


def _pack_slab(x, padded_total):
    """Pack a complex array into one zero-padded float32 (rows, 128) slab.

    Interleaved (re, im) pairs match complex64's memory layout, so the fused
    XLA pack reads the complex buffer exactly once with unit stride.
    """
    xr = jnp.real(x).astype(jnp.float32)
    xi = jnp.imag(x).astype(jnp.float32)
    flat = jnp.stack([xr, xi], axis=-1).reshape(-1)
    pad = padded_total - flat.size
    if pad:
        flat = jnp.pad(flat, (0, pad))
    return flat.reshape(-1, LANE)


def complex_mae_loss(inputs, targets, *, force_kernel=False):
    """inputs, targets: complex arrays of identical shape. Returns scalar f32 loss."""
    assert inputs.shape == targets.shape
    n_elems = math.prod(inputs.shape)           # complex element count N
    if n_elems == 0:
        return jnp.float32(jnp.nan)             # torch: mean over empty tensor is NaN

    total = 2 * n_elems                         # float32 components per tensor
    # Note: complex128 inputs are computed in float32 (small precision loss vs torch fp64).

    if not force_kernel and total <= FAST_PATH_MAX_FLOATS:
        # Tiny inputs: pack + kernel launch would dominate; plain XLA fusion wins.
        d_re = jnp.abs(jnp.real(inputs) - jnp.real(targets))
        d_im = jnp.abs(jnp.imag(inputs) - jnp.imag(targets))
        return (jnp.mean(d_re) + jnp.mean(d_im)).astype(jnp.float32)

    rows_raw = _cdiv(total, LANE)
    tm = min(TM, _round_up(rows_raw, ACC_ROWS))
    steps = _cdiv(rows_raw, tm)
    rows = steps * tm                           # every block fully in bounds
    padded_total = rows * LANE                  # zero padding contributes |0-0| = 0

    x = _pack_slab(inputs, padded_total)
    t = _pack_slab(targets, padded_total)

    in_spec = pl.BlockSpec((tm, LANE), lambda i: (i, 0))
    out_spec = pl.BlockSpec((1, 1), lambda i: (0, 0), memory_space=pltpu.SMEM)

    kernel = functools.partial(_mae_kernel, inv_n=1.0 / n_elems)

    out = pl.pallas_call(
        kernel,
        out_shape=jax.ShapeDtypeStruct((1, 1), jnp.float32),
        grid_spec=pltpu.PrefetchScalarGridSpec(
            num_scalar_prefetch=0,
            grid=(steps,),
            in_specs=[in_spec, in_spec],
            out_specs=out_spec,
            scratch_shapes=[pltpu.VMEM((ACC_ROWS, LANE), jnp.float32)],
        ),
        compiler_params=pltpu.CompilerParams(
            # Reduction axis with a resident accumulator -> must be "arbitrary".
            dimension_semantics=("arbitrary",),
            # Explicit scoped-VMEM headroom (2 streams x 2 buffers x 2 MiB = 8 MiB
            # needed); keeps v5e's 16 MiB default from ever being the limiter.
            vmem_limit_bytes=32 * 1024 * 1024,
        ),
        cost_estimate=pl.CostEstimate(
            flops=3 * padded_total,
            transcendentals=0,
            bytes_accessed=2 * padded_total * 4 + 4,
        ),
    )(x, t)
    return out[0, 0]


if __name__ == "__main__":
    key = jax.random.PRNGKey(0)

    def make_pair(shape, k):
        k1, k2, k3, k4 = jax.random.split(k, 4)
        a = (jax.random.normal(k1, shape, jnp.float32)
             + 1j * jax.random.normal(k2, shape, jnp.float32)).astype(jnp.complex64)
        b = (jax.random.normal(k3, shape, jnp.float32)
             + 1j * jax.random.normal(k4, shape, jnp.float32)).astype(jnp.complex64)
        return a, b

    def ref_loss(a, b):
        return (jnp.mean(jnp.abs(jnp.real(a) - jnp.real(b)))
                + jnp.mean(jnp.abs(jnp.imag(a) - jnp.imag(b))))

    k_small, k_odd, k_big = jax.random.split(key, 3)

    # 1) Small NCHW-like complex input (module's typical shape) -> fast path.
    a, b = make_pair((2, 4, 16, 16), k_small)
    loss = complex_mae_loss(a, b)
    jax.block_until_ready(loss)
    assert jnp.allclose(loss, ref_loss(a, b), rtol=1e-5, atol=1e-5), (loss, ref_loss(a, b))

    # 2) Odd-sized small input forced through the Pallas kernel (exercises padding).
    a, b = make_pair((2, 3, 16, 15), k_odd)
    loss = complex_mae_loss(a, b, force_kernel=True)
    jax.block_until_ready(loss)
    assert jnp.allclose(loss, ref_loss(a, b), rtol=1e-5, atol=1e-5), (loss, ref_loss(a, b))

    # 3) Larger input taking the kernel path by default (multi-step grid), jitted
    #    so the interleave/pad pack fuses as in real use.
    a, b = make_pair((8, 8, 128, 128), k_big)
    loss = jax.jit(complex_mae_loss)(a, b)
    jax.block_until_ready(loss)
    assert jnp.allclose(loss, ref_loss(a, b), rtol=1e-4, atol=1e-5), (loss, ref_loss(a, b))

    print("KERNEL_OK")
</pallas_src>

<mosaic_0001>
module attributes {stable_mosaic.version = 11 : i64} {
  func.func @_mae_kernel(%arg0: i32, %arg1: memref<32x128xf32, #tpu.memory_space<vmem>>, %arg2: memref<32x128xf32, #tpu.memory_space<vmem>>, %arg3: memref<1x1xf32, #tpu.memory_space<smem>>, %arg4: memref<32x128xf32, #tpu.memory_space<vmem>>) attributes {dimension_semantics = [#tpu.dimension_semantics<arbitrary>], iteration_bounds = array<i64: 1>, scalar_prefetch = 0 : i64, scratch_operands = 1 : i64, tpu.core_type = #tpu.core_type<tc>, window_params = [{transform_indices = @transform_0, window_bounds = array<i64: 32, 128>}, {transform_indices = @transform_1, window_bounds = array<i64: 32, 128>}, {transform_indices = @transform_2, window_bounds = array<i64: 1, 1>}]} {
    %c0_i32 = arith.constant 0 : i32
    %0 = arith.cmpi eq, %arg0, %c0_i32 : i32
    %1 = arith.extui %0 : i1 to i32
    %c0_i32_0 = arith.constant 0 : i32
    %2 = arith.cmpi ne, %1, %c0_i32_0 : i32
    scf.if %2 {
      %cst_10 = arith.constant 0.000000e+00 : f32
      %15 = vector.broadcast %cst_10 : f32 to vector<32x128xf32>
      %c0_11 = arith.constant 0 : index
      %c0_12 = arith.constant 0 : index
      %16 = vector.load %arg4[%c0_11, %c0_12] : memref<32x128xf32, #tpu.memory_space<vmem>>, vector<32x128xf32>
      tpu.vector_store %arg4[%c0_11, %c0_12], %15 {strides = array<i32>} : memref<32x128xf32, #tpu.memory_space<vmem>>, vector<32x128xf32>,
    } else {
    }
    %c0 = arith.constant 0 : index
    %c0_1 = arith.constant 0 : index
    %3 = vector.load %arg1[%c0, %c0_1] : memref<32x128xf32, #tpu.memory_space<vmem>>, vector<32x128xf32>
    %c0_2 = arith.constant 0 : index
    %c0_3 = arith.constant 0 : index
    %4 = vector.load %arg2[%c0_2, %c0_3] : memref<32x128xf32, #tpu.memory_space<vmem>>, vector<32x128xf32>
    %5 = arith.subf %3, %4 : vector<32x128xf32>
    %6 = math.absf %5 : vector<32x128xf32>
    %c0_4 = arith.constant 0 : index
    %c0_5 = arith.constant 0 : index
    %7 = vector.load %arg4[%c0_4, %c0_5] : memref<32x128xf32, #tpu.memory_space<vmem>>, vector<32x128xf32>
    %8 = vector.shape_cast %6 : vector<32x128xf32> to vector<1x32x128xf32>
    %cst = arith.constant dense<0.000000e+00> : vector<32x128xf32>
    %9 = vector.multi_reduction <add>, %8, %cst [0] : vector<1x32x128xf32> to vector<32x128xf32>
    %10 = arith.addf %7, %9 : vector<32x128xf32>
    %c0_6 = arith.constant 0 : index
    %c0_7 = arith.constant 0 : index
    %11 = vector.load %arg4[%c0_6, %c0_7] : memref<32x128xf32, #tpu.memory_space<vmem>>, vector<32x128xf32>
    tpu.vector_store %arg4[%c0_6, %c0_7], %10 {strides = array<i32>} : memref<32x128xf32, #tpu.memory_space<vmem>>, vector<32x128xf32>,
    %c0_i32_8 = arith.constant 0 : i32
    %12 = arith.cmpi eq, %arg0, %c0_i32_8 : i32
    %13 = arith.extui %12 : i1 to i32
    %c0_i32_9 = arith.constant 0 : i32
    %14 = arith.cmpi ne, %13, %c0_i32_9 : i32
    scf.if %14 {
      %c0_10 = arith.constant 0 : index
      %c0_11 = arith.constant 0 : index
      %15 = vector.load %arg4[%c0_10, %c0_11] : memref<32x128xf32, #tpu.memory_space<vmem>>, vector<32x128xf32>
      %16 = vector.shape_cast %15 : vector<32x128xf32> to vector<1x32x128xf32>
      %cst_12 = arith.constant dense<0.000000e+00> : vector<1xf32>
      %17 = vector.multi_reduction <add>, %16, %cst_12 [1, 2] : vector<1x32x128xf32> to vector<1xf32>
      %18 = vector.shape_cast %17 : vector<1xf32> to vector<1x1x1xf32>
      %19 = vector.extract %18[0, 0, 0] : f32 from vector<1x1x1xf32>
      %cst_13 = arith.constant 6.94444461E-4 : f32
      %20 = arith.mulf %19, %cst_13 : f32
      %c0_14 = arith.constant 0 : index
      %c0_15 = arith.constant 0 : index
      %21 = memref.load %arg3[%c0_14, %c0_15] : memref<1x1xf32, #tpu.memory_space<smem>>
      memref.store %20, %arg3[%c0_14, %c0_15] : memref<1x1xf32, #tpu.memory_space<smem>>
    } else {
    }
    return
  }
  func.func @transform_0(%arg0: i32) -> (i32, i32) {
    %c0_i32 = arith.constant 0 : i32
    %c0_i32_0 = arith.constant 0 : i32
    return %arg0, %c0_i32 : i32, i32
  }
  func.func @transform_1(%arg0: i32) -> (i32, i32) {
    %c0_i32 = arith.constant 0 : i32
    %c0_i32_0 = arith.constant 0 : i32
    return %arg0, %c0_i32 : i32, i32
  }
  func.func @transform_2(%arg0: i32) -> (i32, i32) {
    %c0_i32 = arith.constant 0 : i32
    %c0_i32_0 = arith.constant 0 : i32
    %c0_i32_1 = arith.constant 0 : i32
    return %c0_i32, %c0_i32_0 : i32, i32
  }
}

</mosaic_0001>

<bundles_post_ra>
// kernel: tpu_custom_call.1
= control target key start
LH: loop header
LB: loop body
LE: loop exit
PB: predicated region body
PF: predicated region fallthrough
CT: control target
= control target key end

     0   :  { %7 = vsyncpa [#allocation4], 0  ;;  %s225_s0 = inlined_call_operand.hbm [shape: f32[32,128], index: 0, kind: input, shape index: {}]   ;;  %s226_s1 = inlined_call_operand.hbm [shape: f32[32,128], index: 1, kind: input, shape index: {}]   ;;  %s227_s2 = inlined_call_operand.hbm [shape: f32[1,1], index: 2, kind: output, shape index: {}]  }
   0x1   :  { %8 = vsyncpa [#allocation7], 0 }
   0x2   :  { %9 = vsyncpa [#allocation5], 0  ;;  %s14_s11 = sshll.u32 %s225_s0, 4  ;;  %s196_s12 = smov [#allocation3]   ;;  %s15_s11 = int_to_ptr.hbm [resolvable:$true] %s14_s11 }
   0x3   :  { %s16_s13 = sshll.u32 %s196_s12, 4  ;;  %s27_s16 = sshll.u32 %s226_s1, 4  ;;  %s17_s13 = int_to_ptr.vmem [resolvable:$true] %s16_s13  ;;  %s28_s16 = int_to_ptr.hbm [resolvable:$true] %s27_s16 }
   0x4   :  { %s197_s17 = smov 128   ;;  %s198_s18 = smov 8  }
   0x5   :  { %22 = dma.hbm_to_vmem [thread:$0]  %s15_s11, 512, %s17_s13, [#allocation4], %s197_s17, %s197_s17, %s198_s18  }
   0x6   :  { %s199_s19 = smov [#allocation6]  }
   0x7   :  { %s29_s20 = sshll.u32 %s199_s19, 4  ;;  %s30_s20 = int_to_ptr.vmem [resolvable:$true] %s29_s20 }
   0x8   :  { %35 = dma.hbm_to_vmem [thread:$0]  %s28_s16, 512, %s30_s20, [#allocation7], %s197_s17, %s197_s17, %s198_s18  }
   0x9   :  { %190 = dma.done.wait [#allocation4], 512  }
   0xa   :  { %191 = vsyncadd [#allocation4], 4294966784 }
   0xb   :  { %192 = dma.done.wait [#allocation7], 512  }
   0xc   :  { %193 = vsyncadd [#allocation7], 4294966784  ;;  %v52_v0 = vld [vmem:[#allocation3] sm:$0xff]  ;;  %v53_v1 = vld [vmem:[#allocation3 + $0x8] sm:$0xff]  ;;  %s111_s21 = sshll.u32 %s227_s2, 4  ;;  %s200_s24 = smov [#allocation8]   ;;  %s112_s21 = int_to_ptr.hbm [resolvable:$true] %s111_s21 }
   0xd   :  { %v54_v2 = vld [vmem:[#allocation3 + $0x10] sm:$0xff]  ;;  %v55_v3 = vld [vmem:[#allocation3 + $0x18] sm:$0xff]  ;;  %v56_v4 = vld [vmem:[#allocation6] sm:$0xff] }
   0xe   :  { %v57_v5 = vld [vmem:[#allocation6 + $0x8] sm:$0xff]  ;;  %v58_v6 = vld [vmem:[#allocation6 + $0x10] sm:$0xff]  ;;  %v59_v7 = vld [vmem:[#allocation6 + $0x18] sm:$0xff]  ;;  %v60_v8 = vsub.f32 %v52_v0, %v56_v4 }
   0xf   :  { %v61_v9 = vsub.f32 %v53_v1, %v57_v5  ;;  %v62_v10 = vsub.f32 %v54_v2, %v58_v6  ;;  %v63_v11 = vsub.f32 %v55_v3, %v59_v7 }
  0x10   :  { %v64_v12 = vand.u32 2147483647, %v60_v8 }
  0x11   :  { %v65_v13 = vand.u32 2147483647, %v61_v9  ;;  %v66_v14 = vand.u32 2147483647, %v62_v10  ;;  %v67_v15 = vand.u32 2147483647, %v63_v11 }
  0x13   :  { %v91_v16 = vadd.f32 %v65_v13, %v64_v12 }
  0x15   :  { %v92_v17 = vadd.f32 %v91_v16, %v66_v14 }
  0x17   :  { %v93_v18 = vadd.f32 %v92_v17, %v67_v15 }
  0x19   :  { %94 = vadd.xlane.f32.xlu0 %v93_v18 }
  0x8c   :  { %v95_v19 = vpop.xlane.xlu0 %94 }
  0x8d   :  { %v96_v20 = vrot.slane %v95_v19, 4 }
  0x8f   :  { %v97_v21 = vadd.f32 %v96_v20, %v95_v19 }
  0x91   :  { %v98_v22 = vrot.slane %v97_v21, 2 }
  0x93   :  { %v99_v23 = vadd.f32 %v98_v22, %v97_v21 }
  0x95   :  { %v100_v24 = vrot.slane %v99_v23, 1 }
  0x97   :  { %v101_v25 = vadd.f32 %v100_v24, %v99_v23 }
  0x99   :  { %123 = vpush %v101_v25 }
  0xca   :  { %s124_s22 = spop %123 }
  0xcb   :  { %s103_s23 = smul.f32 0.00069444446, %s124_s22 }
  0xcd   :  { %105 = sst [smem:[#allocation8]] %s103_s23 }
  0xce   :  { %114 = dma.smem_to_hbm %s200_s24, 16, %s112_s21, [#allocation5]  }
  0xcf   :  { %194 = dma.done.wait [#allocation5], 16  }
  0xd0   :  { %195 = vsyncadd [#allocation5], 4294967280 }
  0xd1   :  { %119 = sfence }
  0xd2   :  { %120 = vsyncpa [#allocation4], 1 }
  0xd3   :  { %121 = vsyncpa [#allocation7], 1 }
  0xd4   :  { %122 = vsyncpa [#allocation5], 1 }

</bundles_post_ra>
